<compile_context>
chip_gen: v5e
topology: v5e:2x2
jax: 0.10.0
libtpu: 0.0.40
codegen_flags: <defaults>
</compile_context>

<pallas_src>
import jax
import jax.numpy as jnp
from jax.experimental import pallas as pl
from jax.experimental.pallas import tpu as pltpu


def _vq_kernel(x_ref, e_ref, e2h_ref, idx_ref, q_ref):
    x = x_ref[0]        # (TN, D) f32 tokens of this tile
    e = e_ref[0]        # (C, D)  f32 codebook (VMEM-resident across N tiles)
    e2h = e2h_ref[0]    # (1, C)  f32 precomputed 0.5 * ||e_c||^2

    # argmin_c ||x - e_c||^2 == argmin_c (0.5*||e_c||^2 - <x, e_c>)   (||x||^2 const per row)
    xe = jax.lax.dot_general(
        x, e, dimension_numbers=(((1,), (1,)), ((), ())),
        preferred_element_type=jnp.float32)                          # (TN, C) on MXU
    score = e2h - xe                                                 # (TN, C), single VALU sub

    idx = jnp.argmin(score, axis=-1).astype(jnp.int32)               # (TN,), XLU reduce
    idx_ref[...] = idx.reshape(1, -1)

    # quantize = embed[idx], realized as an exact 0/1 one-hot matmul (MXU gather).
    onehot = (jax.lax.broadcasted_iota(jnp.int32, score.shape, 1)
              == idx[:, None]).astype(jnp.float32)                   # (TN, C)
    # NOTE: D (=dim) is usually < 128 so this store is a masked vst; folding D into
    # the lane axis would need an in-kernel relayout that costs more than it saves here.
    q_ref[0] = jnp.dot(onehot, e, preferred_element_type=jnp.float32)

# TODO(synk): for very large codebooks (C >= ~1024) chunk the C axis in-kernel
#             (running (min, argmin) carry) so the (TN, C) intermediates shrink.
# TODO(synk): optional bf16 inputs for the xe matmul on v6e/v7x (f32 accumulate),
#             gated behind a tolerance check - argmin may flip on near-ties.


def _tile_vmem_bytes(tn, c, d):
    fixed = 2 * c * d * 4 + 2 * c * 4              # codebook + e2h (double-buffered)
    io = 2 * (tn * d * 4) * 2 + 2 * tn * 4         # x + q double-buffered, idx
    live = 3 * tn * c * 4                          # xe / score / one-hot live values
    return fixed + io + live


def _pick_token_tile(n, c, d, *, max_tile=1024, budget=28 * 1024 * 1024):
    """Largest 128-aligned token tile (<= max_tile) whose working set fits the budget."""
    tn = max_tile
    while tn > 128 and _tile_vmem_bytes(tn, c, d) > budget:
        tn //= 2
    n_min = -(-n // 8) * 8                         # sublane-aligned full problem
    if n_min <= tn:                                # tiny inputs: one tile covers all
        tn = n_min
    return tn


def euclidean_codebook_forward(x, embed, *, max_token_tile=1024):
    """x: (..., D); embed: (H, C, D). Returns (quantize, embed_ind)."""
    needs_codebook_dim = x.ndim < 4
    x = x.astype(jnp.float32)
    if needs_codebook_dim:
        x = x[None, ...]                           # '... -> 1 ...'
    shape = x.shape
    H, D = shape[0], shape[-1]
    flatten = x.reshape(H, -1, D)                  # 'h ... d -> h (...) d'
    N = flatten.shape[1]
    C = embed.shape[1]

    embed = embed.astype(jnp.float32)
    e2_half = (0.5 * jnp.sum(embed * embed, axis=-1))[:, None, :]   # (H, 1, C), hoisted

    TN = _pick_token_tile(N, C, D, max_tile=max_token_tile)
    n_tiles = pl.cdiv(N, TN)
    N_pad = n_tiles * TN
    if N_pad != N:
        flatten = jnp.pad(flatten, ((0, 0), (0, N_pad - N), (0, 0)))

    flops = 4 * H * N_pad * C * D                              # two (TN,C,D) matmuls
    bytes_accessed = H * (2 * N_pad * D * 4 + C * D * 4 + C * 4 + N_pad * 4)
    vmem_limit = min(max(_tile_vmem_bytes(TN, C, D) + (8 << 20), 32 << 20), 56 << 20)

    idx_flat, q_flat = pl.pallas_call(
        _vq_kernel,
        out_shape=(jax.ShapeDtypeStruct((H, N_pad), jnp.int32),
                   jax.ShapeDtypeStruct((H, N_pad, D), jnp.float32)),
        grid_spec=pltpu.PrefetchScalarGridSpec(
            num_scalar_prefetch=0,
            grid=(H, n_tiles),
            in_specs=[
                pl.BlockSpec((1, TN, D), lambda h, n: (h, n, 0)),   # token tile
                pl.BlockSpec((1, C, D), lambda h, n: (h, 0, 0)),    # codebook (resident)
                pl.BlockSpec((1, 1, C), lambda h, n: (h, 0, 0)),    # 0.5*||e||^2 (resident)
            ],
            out_specs=(pl.BlockSpec((1, TN), lambda h, n: (h, n)),
                       pl.BlockSpec((1, TN, D), lambda h, n: (h, n, 0)))),
        compiler_params=pltpu.CompilerParams(
            dimension_semantics=("parallel", "parallel"),
            vmem_limit_bytes=vmem_limit),
        cost_estimate=pl.CostEstimate(
            flops=flops, transcendentals=0, bytes_accessed=bytes_accessed),
    )(flatten, embed, e2_half)

    if N_pad != N:
        idx_flat = idx_flat[:, :N]
        q_flat = q_flat[:, :N]

    embed_ind = idx_flat.reshape(shape[:-1])
    quantize = q_flat.reshape(shape)
    if needs_codebook_dim:
        quantize = quantize[0]                     # '1 ... -> ...'
        embed_ind = embed_ind[0]
    return quantize, embed_ind

# TODO(synk): training-time EMA buffer updates (cluster_size / embed_avg lerp),
# kmeans init, dead-code expiry/replace, DDP all-reduce, gumbel sampling with
# temperature > 0 and the optional QK branch are stateful / host-side logic
# outside the inference hot path.


if __name__ == "__main__":
    # Module config: dim=32, codebook_size=128, num_codebooks=1.
    dim, codebook_size, num_codebooks = 32, 128, 1
    batch, seq = 2, 8

    key = jax.random.PRNGKey(0)
    kx, ke = jax.random.split(key)
    # deterministic stand-in for uniform_init(num_codebooks, codebook_size, dim)
    embed = jax.random.uniform(ke, (num_codebooks, codebook_size, dim),
                               dtype=jnp.float32, minval=-1.0, maxval=1.0)
    x = jax.random.normal(kx, (batch, seq, dim), dtype=jnp.float32)

    quantize, embed_ind = euclidean_codebook_forward(x, embed)
    quantize = jax.block_until_ready(quantize)
    embed_ind = jax.block_until_ready(embed_ind)

    # pure-JAX reference check
    flat = x.reshape(-1, dim)
    d2_ref = (jnp.sum(flat * flat, -1, keepdims=True)
              - 2.0 * flat @ embed[0].T
              + jnp.sum(embed[0] * embed[0], -1)[None, :])
    ind_ref = jnp.argmin(d2_ref, axis=-1).reshape(batch, seq)
    q_ref = embed[0][ind_ref]
    assert quantize.shape == (batch, seq, dim) and embed_ind.shape == (batch, seq)
    assert jnp.array_equal(embed_ind, ind_ref)
    assert jnp.allclose(quantize, q_ref, atol=1e-5)

    print("KERNEL_OK")
</pallas_src>

<mosaic_0001>
module attributes {stable_mosaic.version = 11 : i64} {
  func.func @_vq_kernel(%arg0: i32, %arg1: i32, %arg2: memref<1x16x32xf32, #tpu.memory_space<vmem>>, %arg3: memref<1x128x32xf32, #tpu.memory_space<vmem>>, %arg4: memref<1x1x128xf32, #tpu.memory_space<vmem>>, %arg5: memref<1x16xi32, #tpu.memory_space<vmem>>, %arg6: memref<1x16x32xf32, #tpu.memory_space<vmem>>) attributes {dimension_semantics = [#tpu.dimension_semantics<parallel>, #tpu.dimension_semantics<parallel>], iteration_bounds = array<i64: 1, 1>, scalar_prefetch = 0 : i64, scratch_operands = 0 : i64, tpu.core_type = #tpu.core_type<tc>, window_params = [{transform_indices = @transform_0, window_bounds = array<i64: 1, 16, 32>}, {transform_indices = @transform_1, window_bounds = array<i64: 1, 128, 32>}, {transform_indices = @transform_2, window_bounds = array<i64: 1, 1, 128>}, {transform_indices = @transform_3, window_bounds = array<i64: 1, 16>}, {transform_indices = @transform_4, window_bounds = array<i64: 1, 16, 32>}]} {
    %c0 = arith.constant 0 : index
    %c0_0 = arith.constant 0 : index
    %c0_1 = arith.constant 0 : index
    %0 = vector.load %arg2[%c0, %c0_0, %c0_1] : memref<1x16x32xf32, #tpu.memory_space<vmem>>, vector<1x16x32xf32>
    %1 = vector.shape_cast %0 : vector<1x16x32xf32> to vector<16x32xf32>
    %c0_2 = arith.constant 0 : index
    %c0_3 = arith.constant 0 : index
    %c0_4 = arith.constant 0 : index
    %2 = vector.load %arg3[%c0_2, %c0_3, %c0_4] : memref<1x128x32xf32, #tpu.memory_space<vmem>>, vector<1x128x32xf32>
    %3 = vector.shape_cast %2 : vector<1x128x32xf32> to vector<128x32xf32>
    %c0_5 = arith.constant 0 : index
    %c0_6 = arith.constant 0 : index
    %c0_7 = arith.constant 0 : index
    %4 = vector.load %arg4[%c0_5, %c0_6, %c0_7] : memref<1x1x128xf32, #tpu.memory_space<vmem>>, vector<1x1x128xf32>
    %5 = vector.shape_cast %4 : vector<1x1x128xf32> to vector<1x128xf32>
    %cst = arith.constant dense<0.000000e+00> : vector<16x128xf32>
    %6 = tpu.matmul %1, %3, %cst {dimension_numbers = #tpu.dot_dimension_numbers<[1], [1], [0], [0], [0, 0, 1, 0], [], []>} : vector<16x32xf32>, vector<128x32xf32>, vector<16x128xf32> -> vector<16x128xf32>
    %7 = vector.broadcast %5 : vector<1x128xf32> to vector<16x128xf32>
    %8 = arith.subf %7, %6 : vector<16x128xf32>
    %9 = tpu.reduce_index %8 {axis = 1 : i32, kind = #tpu.reduction_kind<arg_min>} : vector<16x128xf32> -> vector<16xi32>
    %10 = vector.shape_cast %9 : vector<16xi32> to vector<1x16xi32>
    %c0_8 = arith.constant 0 : index
    %c0_9 = arith.constant 0 : index
    %11 = vector.load %arg5[%c0_8, %c0_9] : memref<1x16xi32, #tpu.memory_space<vmem>>, vector<1x16xi32>
    tpu.vector_store %arg5[%c0_8, %c0_9], %10 {strides = array<i32>} : memref<1x16xi32, #tpu.memory_space<vmem>>, vector<1x16xi32>,
    %12 = tpu.iota {dimensions = array<i32: 1>} : vector<16x128xi32>
    %13 = vector.shape_cast %9 : vector<16xi32> to vector<16x1xi32>
    %14 = vector.broadcast %13 : vector<16x1xi32> to vector<16x128xi32>
    %15 = arith.cmpi eq, %12, %14 : vector<16x128xi32>
    %16 = arith.extui %15 : vector<16x128xi1> to vector<16x128xi32>
    %17 = arith.sitofp %16 : vector<16x128xi32> to vector<16x128xf32>
    %cst_10 = arith.constant dense<0.000000e+00> : vector<16x32xf32>
    %18 = tpu.matmul %17, %3, %cst_10 {dimension_numbers = #tpu.dot_dimension_numbers<[1], [0], [0], [1], [0, 0, 1, 1], [], []>} : vector<16x128xf32>, vector<128x32xf32>, vector<16x32xf32> -> vector<16x32xf32>
    %c0_11 = arith.constant 0 : index
    %c0_12 = arith.constant 0 : index
    %c0_13 = arith.constant 0 : index
    %19 = vector.load %arg6[%c0_11, %c0_12, %c0_13] : memref<1x16x32xf32, #tpu.memory_space<vmem>>, vector<1x16x32xf32>
    %20 = vector.shape_cast %19 : vector<1x16x32xf32> to vector<16x32xf32>
    %21 = vector.shape_cast %18 : vector<16x32xf32> to vector<1x16x32xf32>
    tpu.vector_store %arg6[%c0_11, %c0_12, %c0_13], %21 {strides = array<i32>} : memref<1x16x32xf32, #tpu.memory_space<vmem>>, vector<1x16x32xf32>,
    return
  }
  func.func @transform_0(%arg0: i32, %arg1: i32) -> (i32, i32, i32) {
    %c0_i32 = arith.constant 0 : i32
    %c0_i32_0 = arith.constant 0 : i32
    return %arg0, %arg1, %c0_i32 : i32, i32, i32
  }
  func.func @transform_1(%arg0: i32, %arg1: i32) -> (i32, i32, i32) {
    %c0_i32 = arith.constant 0 : i32
    %c0_i32_0 = arith.constant 0 : i32
    %c0_i32_1 = arith.constant 0 : i32
    return %arg0, %c0_i32, %c0_i32_0 : i32, i32, i32
  }
  func.func @transform_2(%arg0: i32, %arg1: i32) -> (i32, i32, i32) {
    %c0_i32 = arith.constant 0 : i32
    %c0_i32_0 = arith.constant 0 : i32
    %c0_i32_1 = arith.constant 0 : i32
    return %arg0, %c0_i32, %c0_i32_0 : i32, i32, i32
  }
  func.func @transform_3(%arg0: i32, %arg1: i32) -> (i32, i32) {
    %c0_i32 = arith.constant 0 : i32
    return %arg0, %arg1 : i32, i32
  }
  func.func @transform_4(%arg0: i32, %arg1: i32) -> (i32, i32, i32) {
    %c0_i32 = arith.constant 0 : i32
    %c0_i32_0 = arith.constant 0 : i32
    return %arg0, %arg1, %c0_i32 : i32, i32, i32
  }
}

</mosaic_0001>

<bundles_post_ra>
// kernel: tpu_custom_call.1
= control target key start
LH: loop header
LB: loop body
LE: loop exit
PB: predicated region body
PF: predicated region fallthrough
CT: control target
= control target key end

     0   :  { %10 = vsyncpa [#allocation3], 0  ;;  %vm37_vm0 = vcmask 261120   ;;  %s423_s0 = inlined_call_operand.vmem [shape: f32[1,16,32], index: 0, kind: input, shape index: {}]   ;;  %s424_s1 = inlined_call_operand.vmem [shape: f32[1,128,32], index: 1, kind: input, shape index: {}]   ;;  %s425_s2 = inlined_call_operand.vmem [shape: f32[1,1,128], index: 2, kind: input, shape index: {}]   ;;  %s426_s3 = inlined_call_operand.hbm [shape: s32[1,16], index: 3, kind: output, shape index: {0}]   ;;  %s427_s4 = inlined_call_operand.hbm [shape: f32[1,16,32], index: 4, kind: output, shape index: {1}]  }
   0x1   :  { %v35_v0 = vld [vmem:[%s424_s1 + $0x78] sm:$0xff]  ;;  %v34_v1 = vld [vmem:[%s424_s1 + $0x70] sm:$0xff] }
   0x2   :  { %198 = vmatpush.xpose.msk.msra.mxu0 %vm37_vm0, %v35_v0  ;;  %220 = vmatpush.xpose.msk.msra.mxu2 %vm37_vm0, %v35_v0 }
   0x3   :  { %139 = vmatpush.msra.mxu1 %v35_v0 }
   0x4   :  { %11 = vsyncpa [#allocation5], 0  ;;  %v33_v2 = vld [vmem:[%s424_s1 + $0x68] sm:$0xff]  ;;  %v32_v3 = vld [vmem:[%s424_s1 + $0x60] sm:$0xff]  ;;  %v124_v23 = vlaneseq  ;;  %v294_v26 = vmov 1.0   ;;  %s171_s29 = sshll.u32 %s426_s3, 4  ;;  %s172_s29 = int_to_ptr.hbm [resolvable:$true] %s171_s29 }
   0x5   :  { %140 = vmatpush.msra.mxu1 %v34_v1  ;;  %v31_v4 = vld [vmem:[%s424_s1 + $0x58] sm:$0xff]  ;;  %v30_v5 = vld [vmem:[%s424_s1 + $0x50] sm:$0xff]  ;;  %v29_v6 = vld [vmem:[%s424_s1 + $0x48] sm:$0xff]  ;;  %vm129_vm2 = vcmask 130112   ;;  %vm131_vm4 = vcmask 122880   ;;  %s181_s3 = sshll.u32 %s427_s4, 4  ;;  %s182_s3 = int_to_ptr.hbm [resolvable:$true] %s181_s3 }
   0x6   :  { %199 = vmatpush.xpose.msk.msra.mxu0 %vm37_vm0, %v34_v1  ;;  %221 = vmatpush.xpose.msk.msra.mxu2 %vm37_vm0, %v34_v1  ;;  %v28_v7 = vld [vmem:[%s424_s1 + $0x40] sm:$0xff]  ;;  %v27_v8 = vld [vmem:[%s424_s1 + $0x38] sm:$0xff]  ;;  %v26_v9 = vld [vmem:[%s424_s1 + $0x30] sm:$0xff]  ;;  %v125_v24 = vand.u32 127, %v124_v23  ;;  %s297_s7 = smov 128   ;;  %s298_s8 = smov 8  }
   0x7   :  { %141 = vmatpush.msra.mxu1 %v33_v2  ;;  %v25_v10 = vld [vmem:[%s424_s1 + $0x28] sm:$0xff]  ;;  %v24_v11 = vld [vmem:[%s424_s1 + $0x20] sm:$0xff]  ;;  %v23_v12 = vld [vmem:[%s424_s1 + $0x18] sm:$0xff] }
   0x8   :  { %v22_v13 = vld [vmem:[%s424_s1 + $0x10] sm:$0xff]  ;;  %v21_v14 = vld [vmem:[%s424_s1 + $0x8] sm:$0xff]  ;;  %v20_v15 = vld [vmem:[%s424_s1] sm:$0xff]  ;;  %v127_v27 = vadd.s32 4294967288, %v125_v24 }
   0x9   :  { %142 = vmatpush.msra.mxu1 %v32_v3  ;;  %v18_v16 = vld [vmem:[%s423_s0] sm:$0xff]  ;;  %v19_v17 = vld [vmem:[%s423_s0 + $0x8] sm:$0xff]  ;;  %s295_s0 = smov [#allocation2]  }
   0xa   :  { %200 = vmatpush.xpose.msk.msra.mxu0 %vm37_vm0, %v33_v2  ;;  %222 = vmatpush.xpose.msk.msra.mxu2 %vm37_vm0, %v33_v2  ;;  %v241_v18 = vld [vmem:[%s425_s2] ss:$0 sm:$0xff]  ;;  %s169_s26 = sshll.u32 %s295_s0, 4  ;;  %s296_s2 = smov [#allocation4]   ;;  %s170_s26 = int_to_ptr.vmem [resolvable:$true] %s169_s26 }
   0xb   :  { %143 = vmatpush.msra.mxu1 %v31_v4  ;;  %s179_s30 = sshll.u32 %s296_s2, 4  ;;  %s180_s30 = int_to_ptr.vmem [resolvable:$true] %s179_s30 }
   0xd   :  { %144 = vmatpush.msra.mxu1 %v30_v5 }
   0xe   :  { %201 = vmatpush.xpose.msk.msra.mxu0 %vm37_vm0, %v32_v3  ;;  %223 = vmatpush.xpose.msk.msra.mxu2 %vm37_vm0, %v32_v3 }
   0xf   :  { %145 = vmatpush.msra.mxu1 %v29_v6 }
  0x11   :  { %146 = vmatpush.msra.mxu1 %v28_v7 }
  0x12   :  { %202 = vmatpush.xpose.msk.msra.mxu0 %vm37_vm0, %v31_v4  ;;  %224 = vmatpush.xpose.msk.msra.mxu2 %vm37_vm0, %v31_v4 }
  0x13   :  { %147 = vmatpush.msra.mxu1 %v27_v8 }
  0x15   :  { %148 = vmatpush.msra.mxu1 %v26_v9 }
  0x16   :  { %203 = vmatpush.xpose.msk.msra.mxu0 %vm37_vm0, %v30_v5  ;;  %225 = vmatpush.xpose.msk.msra.mxu2 %vm37_vm0, %v30_v5 }
  0x17   :  { %149 = vmatpush.msra.mxu1 %v25_v10 }
  0x19   :  { %150 = vmatpush.msra.mxu1 %v24_v11 }
  0x1a   :  { %204 = vmatpush.xpose.msk.msra.mxu0 %vm37_vm0, %v29_v6  ;;  %226 = vmatpush.xpose.msk.msra.mxu2 %vm37_vm0, %v29_v6 }
  0x1b   :  { %151 = vmatpush.msra.mxu1 %v23_v12 }
  0x1d   :  { %152 = vmatpush.msra.mxu1 %v22_v13 }
  0x1e   :  { %205 = vmatpush.xpose.msk.msra.mxu0 %vm37_vm0, %v28_v7  ;;  %227 = vmatpush.xpose.msk.msra.mxu2 %vm37_vm0, %v28_v7 }
  0x1f   :  { %153 = vmatpush.msra.mxu1 %v21_v14 }
  0x21   :  { %154 = vmatpush.msra.mxu1 %v20_v15 }
  0x22   :  { %206 = vmatpush.xpose.msk.msra.mxu0 %vm37_vm0, %v27_v8  ;;  %228 = vmatpush.xpose.msk.msra.mxu2 %vm37_vm0, %v27_v8 }
  0x26   :  { %207 = vmatpush.xpose.msk.msra.mxu0 %vm37_vm0, %v26_v9  ;;  %229 = vmatpush.xpose.msk.msra.mxu2 %vm37_vm0, %v26_v9 }
  0x2a   :  { %208 = vmatpush.xpose.msk.msra.mxu0 %vm37_vm0, %v25_v10  ;;  %230 = vmatpush.xpose.msk.msra.mxu2 %vm37_vm0, %v25_v10 }
  0x2e   :  { %209 = vmatpush.xpose.msk.msra.mxu0 %vm37_vm0, %v24_v11  ;;  %231 = vmatpush.xpose.msk.msra.mxu2 %vm37_vm0, %v24_v11 }
  0x32   :  { %210 = vmatpush.xpose.msk.msra.mxu0 %vm37_vm0, %v23_v12  ;;  %232 = vmatpush.xpose.msk.msra.mxu2 %vm37_vm0, %v23_v12 }
  0x36   :  { %211 = vmatpush.xpose.msk.msra.mxu0 %vm37_vm0, %v22_v13  ;;  %233 = vmatpush.xpose.msk.msra.mxu2 %vm37_vm0, %v22_v13 }
  0x3a   :  { %212 = vmatpush.xpose.msk.msra.mxu0 %vm37_vm0, %v21_v14  ;;  %234 = vmatpush.xpose.msk.msra.mxu2 %vm37_vm0, %v21_v14 }
  0x3e   :  { %213 = vmatpush.xpose.msk.msra.mxu0 %vm37_vm0, %v20_v15  ;;  %235 = vmatpush.xpose.msk.msra.mxu2 %vm37_vm0, %v20_v15 }
  0x41   :  { %214 = vmatmul.msk.f32.vlgmr.msra.gmra.mxu0 %vm37_vm0, %v18_v16  ;;  %215 = vmatmul.msk.f32.vlgmr.msra.gmra.mxu2 %vm37_vm0, %v19_v17 }
  0xbe   :  { %v109_v19 = vpop.f32.mrf.mxu0 }
  0xbf   :  { %v118_v20 = vsub.f32 %v241_v18, %v109_v19 }
  0xc1   :  { %120 = vmin.index.xlane.f32.xlu0 %v118_v20 }
  0xc4   :  { %v112_v21 = vpop.f32.mrf.mxu2 }
  0xc5   :  { %v119_v22 = vsub.f32 %v241_v18, %v112_v21 }
  0xc9   :  { %122 = vmin.index.xlane.f32.xlu0 %v119_v22 }
 0x134   :  { %v121_v25 = vpop.xlane.xlu0 %120 }
 0x135   :  { %vm133_vm1 = vcmp.eq.s32.totalorder %v125_v24, %v121_v25  ;;  %v126_v29 = vperm.slane %v121_v25, %v125_v24 }
 0x136   :  { %218 = vmatmul.msk.f32.vlgmr.msra.gmra.mxu1 %vm133_vm1, %v294_v26 }
 0x13c   :  { %v123_v28 = vpop.xlane.xlu0 %122 }
 0x13d   :  { %v128_v30 = vperm.slane %v123_v28, %v127_v27  ;;  %vm134_vm3 = vcmp.eq.s32.totalorder %v125_v24, %v123_v28 }
 0x13e   :  { %219 = vmatmul.msk.f32.gmra.mxu1 %vm134_vm3, %v294_v26 }
 0x13f   :  { %v130_v31 = vsel %vm129_vm2, %v128_v30, %v126_v29 }
 0x140   :  { %132 = vst.msk [vmem:[#allocation2] sm:$0x1] %vm131_vm4, %v130_v31 }
 0x141   :  { %174 = dma.vmem_to_hbm [thread:$0]  %s170_s26, 16, %s172_s29, [#allocation3]  }
 0x1b3   :  { %v156_v32 = vpop.f32.mrf.mxu1 }
 0x1b4   :  { %162 = vst.msk [vmem:[#allocation4] sm:$0xff] %vm37_vm0, %v156_v32 }
 0x1bb   :  { %v159_v33 = vpop.f32.mrf.mxu1 }
 0x1bc   :  { %163 = vst.msk [vmem:[#allocation4 + $0x8] sm:$0xff] %vm37_vm0, %v159_v33 }
 0x1bd   :  { %187 = dma.vmem_to_hbm [thread:$0]  %s180_s30, 256, %s182_s3, [#allocation5], %s297_s7, %s297_s7, %s298_s8  }
 0x1be   :  { %290 = dma.done.wait [#allocation3], 16  }
 0x1bf   :  { %291 = vsyncadd [#allocation3], 4294967280 }
 0x1c0   :  { %292 = dma.done.wait [#allocation5], 256  }
 0x1c1   :  { %293 = vsyncadd [#allocation5], 4294967040 }
 0x1c2   :  { %196 = vsyncpa [#allocation3], 1 }
 0x1c3   :  { %197 = vsyncpa [#allocation5], 1 }

</bundles_post_ra>
